<compile_context>
chip_gen: v7x
topology: tpu7x:2x2x1
jax: 0.10.0
libtpu: 0.0.40
codegen_flags: <defaults>
</compile_context>

<pallas_src>
import functools

import jax
import jax.numpy as jnp
import numpy as np
from jax.experimental import pallas as pl
from jax.experimental.pallas import tpu as pltpu


def _elu(v):
    # ELU(alpha=1): x if x > 0 else exp(x) - 1  (min() keeps exp() finite in both branches)
    return jnp.where(v > 0, v, jnp.exp(jnp.minimum(v, 0.0)) - 1.0)


# ------------------------------------------------------------------ fused kernel
def _conv_block_kernel(x_ref, w1_ref, b1_ref, w2_ref, b2_ref, pa_ref, pb_ref, o_ref, *,
                       k, p, n, h, pack, matmul_dtype):
    nh = n * h

    # Per-image top/bottom boundary masks for the batch-folded row stack (hoisted once).
    row_idx = jax.lax.broadcasted_iota(jnp.int32, (nh, 1), 0)
    is_img_top = functools.reduce(jnp.logical_or,
                                  [row_idx == b * h for b in range(n)])
    is_img_bot = functools.reduce(jnp.logical_or,
                                  [row_idx == b * h + (h - 1) for b in range(n)])

    def vclamp_shift(src, s):
        """out[y] = src[clamp(y + s, image_top, image_bottom)] for batch-folded rows.

        One XLU sublane roll + one VPU select per unit step: no VMEM scratch, no masked
        row/column-strip stores, no scratch read-back (vertical replication pad)."""
        if s == 0:
            return src
        out = src
        for _ in range(abs(s)):
            if s > 0:   # row y takes row y+1, clamped at each image's bottom row
                out = jnp.where(is_img_bot, out, pltpu.roll(out, nh - 1, axis=0))
            else:       # row y takes row y-1, clamped at each image's top row
                out = jnp.where(is_img_top, out, pltpu.roll(out, 1, axis=0))
        return out

    def conv(src, w_ref, b_ref):
        """ReplicationPad2d(p) + Conv2d(k, stride 1) on lane-packed rows (h, w*c):
        k accumulating MXU dots with M = n*h (batch folded); the horizontal replication
        pad is folded into the banded weights, the vertical one into vclamp_shift."""
        acc = None
        for dy in range(k):
            lhs = vclamp_shift(src, dy - p).astype(matmul_dtype)   # cast once, at the MXU operand
            d = jnp.dot(lhs, w_ref[dy], preferred_element_type=jnp.float32)
            acc = d if acc is None else acc + d
        return acc + b_ref[...]

    # conv1 (+ELU) -> conv2 -> ELU; all intermediates stay in vregs (no HBM, no scratch).
    y1 = _elu(conv(x_ref[...], w1_ref, b1_ref))     # (n*h, w*cout) f32
    e = _elu(conv(y1, w2_ref, b2_ref))              # (n*h, w*cout) f32

    # Odd-size replication pad + AvgPool2d(2,2) as constant matmuls that directly emit
    # the packed, lane-dense output layout (`pack` pooled rows side by side per stored
    # row), so the final store is a full 128-lane unmasked vst.
    out = None
    for j in range(pack):
        t = jnp.dot(pa_ref[j], e, preferred_element_type=jnp.float32)
        t = jnp.dot(t, pb_ref[j], preferred_element_type=jnp.float32)
        out = t if out is None else out + t
    o_ref[...] = out.astype(o_ref.dtype)


# ------------------------------------------------------- wrapper-side constants
def _banded_conv_weight(w_hwio, w_img, p, dtype):
    """(k, k, cin, cout) HWIO -> (k, w_img*cin, w_img*cout) per-vertical-tap banded
    weight over lane-packed rows, with the horizontal replication pad folded in:
      out[dy, xs*cin+ci, xo*cout+co] = sum_dx W[dy, dx, ci, co] * [clamp(xo+dx-p) == xs].
    """
    k = w_hwio.shape[0]
    cin, cout = w_hwio.shape[2], w_hwio.shape[3]
    sel = np.zeros((k, w_img, w_img), np.float32)          # (dx, x_out, x_src)
    for dx in range(k):
        for xo in range(w_img):
            xs = min(max(xo + dx - p, 0), w_img - 1)
            sel[dx, xo, xs] += 1.0
    banded = jnp.einsum("ydic,dos->ysioc", w_hwio, jnp.asarray(sel))
    return banded.reshape(k, w_img * cin, w_img * cout).astype(dtype)


def _packed_pool_matrices(n, h, w, cout, pad_h, pad_w, pack):
    """Constant matrices so that  sum_j A[j] @ e @ B[j]  equals the (edge-clamped,
    odd-size replication-padded) 2x2/stride-2 average pool of the batch-folded rows,
    emitted with `pack` pooled rows packed side by side per output row."""
    hh, wh = (h + pad_h) // 2, (w + pad_w) // 2
    rows_packed = (n * hh) // pack
    A = np.zeros((pack, rows_packed, n * h), np.float32)
    B = np.zeros((pack, w * cout, pack * wh * cout), np.float32)
    for j in range(pack):
        for rr in range(rows_packed):
            q = rr * pack + j                     # pooled-row index (= b*hh + r)
            b, r = q // hh, q % hh
            for dy in range(2):
                A[j, rr, b * h + min(2 * r + dy, h - 1)] += 0.5
        for c in range(wh):
            for dx in range(2):
                xs = min(2 * c + dx, w - 1)
                for ch in range(cout):
                    B[j, xs * cout + ch, j * wh * cout + c * cout + ch] += 0.5
    return jnp.asarray(A), jnp.asarray(B)


# ---------------------------------------------------------------- full forward
def conv_block_forward(x_nchw, params, kernel_size, matmul_dtype=jnp.bfloat16):
    """ConvBlock.forward: conv1(ELU) -> conv2 -> odd-size replication pad -> ELU ->
    AvgPool2d(2, 2).  NCHW in/out like PyTorch; one fused Pallas call, batch folded."""
    k = kernel_size
    assert k % 2 == 1, "ConvBlock assumes odd kernel_size"
    p = (k - 1) // 2
    n, cin, h, w = x_nchw.shape
    cout = params["b1"].shape[0]
    pad_h, pad_w = h % 2, w % 2
    hh, wh = (h + pad_h) // 2, (w + pad_w) // 2

    # NCHW -> batch-folded lane-packed rows (n*h, w*cin): channel fastest on the lane axis.
    x = jnp.transpose(x_nchw, (0, 2, 3, 1)).reshape(n * h, w * cin)

    w1b = _banded_conv_weight(params["w1"], w, p, matmul_dtype)   # (k, w*cin,  w*cout)
    w2b = _banded_conv_weight(params["w2"], w, p, matmul_dtype)   # (k, w*cout, w*cout)
    b1p = jnp.tile(params["b1"].reshape(1, cout).astype(jnp.float32), (1, w))
    b2p = jnp.tile(params["b2"].reshape(1, cout).astype(jnp.float32), (1, w))

    # Lane-dense output packing: `pack` pooled rows per stored row -> full 128-lane store.
    lane_out, rows_out = wh * cout, n * hh
    pack = 1
    if lane_out < 128 and 128 % lane_out == 0 and rows_out % (128 // lane_out) == 0:
        pack = 128 // lane_out
    rows_packed = rows_out // pack
    pa, pb = _packed_pool_matrices(n, h, w, cout, pad_h, pad_w, pack)

    kern = functools.partial(_conv_block_kernel, k=k, p=p, n=n, h=h, pack=pack,
                             matmul_dtype=matmul_dtype)
    out = pl.pallas_call(
        kern,
        out_shape=jax.ShapeDtypeStruct((rows_packed, pack * lane_out), jnp.float32),
        grid=(1,),                                    # batch folded into M -> one step
        in_specs=[
            pl.BlockSpec((n * h, w * cin), lambda i: (0, 0)),                # x (lane-packed rows)
            pl.BlockSpec((k, w * cin, w * cout), lambda i: (0, 0, 0)),       # banded W1 (bf16)
            pl.BlockSpec((1, w * cout), lambda i: (0, 0)),                   # bias1 (packed, f32)
            pl.BlockSpec((k, w * cout, w * cout), lambda i: (0, 0, 0)),      # banded W2 (bf16)
            pl.BlockSpec((1, w * cout), lambda i: (0, 0)),                   # bias2 (packed, f32)
            pl.BlockSpec((pack, rows_packed, n * h), lambda i: (0, 0, 0)),   # row-pool/pack mats
            pl.BlockSpec((pack, w * cout, pack * lane_out), lambda i: (0, 0, 0)),  # col-pool/pack
        ],
        out_specs=pl.BlockSpec((rows_packed, pack * lane_out), lambda i: (0, 0)),
        compiler_params=pltpu.CompilerParams(dimension_semantics=("arbitrary",)),
    )(x, w1b, b1p, w2b, b2p, pa, pb)

    # (rows_packed, pack*wh*cout) row-major == (n, hh, wh, cout) row-major: free unpack.
    out = out.reshape(n, hh, wh, cout)
    return jnp.transpose(out, (0, 3, 1, 2))           # -> NCHW


# -------------------------------------------------------------- pure-JAX reference
def _reference_forward(x_nchw, params, kernel_size, matmul_dtype=jnp.float32):
    """XLA reference of the PyTorch module; conv operands optionally cast to
    `matmul_dtype` to mirror the kernel's MXU precision (f32 accumulation)."""
    k = kernel_size
    p = (k - 1) // 2
    x = jnp.transpose(x_nchw, (0, 2, 3, 1))
    in_h, in_w = x.shape[1], x.shape[2]

    def conv(xin, wgt, b):
        xp = jnp.pad(xin, ((0, 0), (p, p), (p, p), (0, 0)), mode="edge")
        y = jax.lax.conv_general_dilated(
            xp.astype(matmul_dtype), wgt.astype(matmul_dtype),
            window_strides=(1, 1), padding="VALID",
            dimension_numbers=("NHWC", "HWIO", "NHWC"),
            preferred_element_type=jnp.float32)
        return y + b.astype(jnp.float32)

    y1 = _elu(conv(x, params["w1"], params["b1"]))
    y2 = conv(y1, params["w2"], params["b2"])
    y2p = jnp.pad(y2, ((0, 0), (0, in_h % 2), (0, in_w % 2), (0, 0)), mode="edge")
    e = _elu(y2p)
    nb, he, we, c = e.shape
    out = e.reshape(nb, he // 2, 2, we // 2, 2, c).mean(axis=(2, 4))
    return jnp.transpose(out, (0, 3, 1, 2))


# -------------------------------------------------------------------------- main
if __name__ == "__main__":
    batch, input_nc, output_nc = 2, 4, 8
    height = width = 16
    kernel_size = 3

    key = jax.random.PRNGKey(0)
    kx, kw1, kb1, kw2, kb2 = jax.random.split(key, 5)

    x = jax.random.normal(kx, (batch, input_nc, height, width), dtype=jnp.float32)
    params = {
        # HWIO weights (deterministic synthetic init, nn.Conv2d shapes)
        "w1": 0.1 * jax.random.normal(kw1, (kernel_size, kernel_size, input_nc, output_nc),
                                      dtype=jnp.float32),
        "b1": 0.1 * jax.random.normal(kb1, (output_nc,), dtype=jnp.float32),
        "w2": 0.1 * jax.random.normal(kw2, (kernel_size, kernel_size, output_nc, output_nc),
                                      dtype=jnp.float32),
        "b2": 0.1 * jax.random.normal(kb2, (output_nc,), dtype=jnp.float32),
    }

    fwd = jax.jit(functools.partial(conv_block_forward, kernel_size=kernel_size))
    out = jax.block_until_ready(fwd(x, params))
    assert out.shape == (batch, output_nc, height // 2, width // 2), out.shape

    # Check vs. a matched-precision reference (bf16 MXU operands, f32 accumulate).
    # Slightly looser than pure rounding noise because the kernel folds the clamped
    # horizontal pad taps into the bf16 banded weights (extra ~1e-3-level rounding at
    # the image edges), which the reference accumulates in f32 instead.
    ref_bf16 = jax.block_until_ready(
        _reference_forward(x, params, kernel_size, matmul_dtype=jnp.bfloat16))
    assert jnp.allclose(out, ref_bf16, rtol=5e-3, atol=5e-3), \
        float(jnp.max(jnp.abs(out - ref_bf16)))

    # Loose sanity check vs. the full-f32 reference (only difference: bf16 MXU operands).
    ref_f32 = jax.block_until_ready(
        _reference_forward(x, params, kernel_size, matmul_dtype=jnp.float32))
    assert jnp.allclose(out, ref_f32, rtol=5e-2, atol=5e-2), \
        float(jnp.max(jnp.abs(out - ref_f32)))

    print("KERNEL_OK")
</pallas_src>

<mosaic_0001>
module attributes {stable_mosaic.version = 11 : i64} {
  func.func @_conv_block_kernel(%arg0: i32, %arg1: memref<32x64xf32, #tpu.memory_space<vmem>>, %arg2: memref<3x64x128xbf16, #tpu.memory_space<vmem>>, %arg3: memref<1x128xf32, #tpu.memory_space<vmem>>, %arg4: memref<3x128x128xbf16, #tpu.memory_space<vmem>>, %arg5: memref<1x128xf32, #tpu.memory_space<vmem>>, %arg6: memref<2x8x32xf32, #tpu.memory_space<vmem>>, %arg7: memref<2x128x128xf32, #tpu.memory_space<vmem>>, %arg8: memref<8x128xf32, #tpu.memory_space<vmem>>) attributes {dimension_semantics = [#tpu.dimension_semantics<arbitrary>], iteration_bounds = array<i64: 1>, scalar_prefetch = 0 : i64, scratch_operands = 0 : i64, tpu.core_type = #tpu.core_type<tc>, window_params = [{pipeline_mode = #tpu.pipeline_mode<synchronous>, transform_indices = @transform_0, window_bounds = array<i64: 32, 64>}, {pipeline_mode = #tpu.pipeline_mode<synchronous>, transform_indices = @transform_1, window_bounds = array<i64: 3, 64, 128>}, {pipeline_mode = #tpu.pipeline_mode<synchronous>, transform_indices = @transform_2, window_bounds = array<i64: 1, 128>}, {pipeline_mode = #tpu.pipeline_mode<synchronous>, transform_indices = @transform_3, window_bounds = array<i64: 3, 128, 128>}, {pipeline_mode = #tpu.pipeline_mode<synchronous>, transform_indices = @transform_4, window_bounds = array<i64: 1, 128>}, {pipeline_mode = #tpu.pipeline_mode<synchronous>, transform_indices = @transform_5, window_bounds = array<i64: 2, 8, 32>}, {pipeline_mode = #tpu.pipeline_mode<synchronous>, transform_indices = @transform_6, window_bounds = array<i64: 2, 128, 128>}, {pipeline_mode = #tpu.pipeline_mode<synchronous>, transform_indices = @transform_7, window_bounds = array<i64: 8, 128>}]} {
    %0 = tpu.iota {dimensions = array<i32: 0>} : vector<32x1xi32>
    %c0_i32 = arith.constant 0 : i32
    %1 = vector.broadcast %c0_i32 : i32 to vector<32x1xi32>
    %2 = arith.cmpi eq, %0, %1 : vector<32x1xi32>
    %c16_i32 = arith.constant 16 : i32
    %3 = vector.broadcast %c16_i32 : i32 to vector<32x1xi32>
    %4 = arith.cmpi eq, %0, %3 : vector<32x1xi32>
    %5 = arith.ori %2, %4 : vector<32x1xi1>
    %c15_i32 = arith.constant 15 : i32
    %6 = vector.broadcast %c15_i32 : i32 to vector<32x1xi32>
    %7 = arith.cmpi eq, %0, %6 : vector<32x1xi32>
    %c31_i32 = arith.constant 31 : i32
    %8 = vector.broadcast %c31_i32 : i32 to vector<32x1xi32>
    %9 = arith.cmpi eq, %0, %8 : vector<32x1xi32>
    %10 = arith.ori %7, %9 : vector<32x1xi1>
    %c0 = arith.constant 0 : index
    %c0_0 = arith.constant 0 : index
    %11 = vector.load %arg1[%c0, %c0_0] : memref<32x64xf32, #tpu.memory_space<vmem>>, vector<32x64xf32>
    %c1_i32 = arith.constant 1 : i32
    %12 = tpu.dynamic_rotate %11 by %c1_i32 dim 0 : vector<32x64xf32>, i32 -> vector<32x64xf32>
    %13 = vector.shape_cast %5 : vector<32x1xi1> to vector<32x1xi1>
    %14 = vector.broadcast %13 : vector<32x1xi1> to vector<32x64xi1>
    %15 = arith.select %14, %11, %12 : vector<32x64xi1>, vector<32x64xf32>
    %16 = arith.truncf %15 : vector<32x64xf32> to vector<32x64xbf16>
    %c0_1 = arith.constant 0 : index
    %c0_2 = arith.constant 0 : index
    %c0_3 = arith.constant 0 : index
    %17 = vector.load %arg2[%c0_1, %c0_2, %c0_3] : memref<3x64x128xbf16, #tpu.memory_space<vmem>>, vector<1x64x128xbf16>
    %18 = vector.shape_cast %17 : vector<1x64x128xbf16> to vector<64x128xbf16>
    %cst = arith.constant dense<0.000000e+00> : vector<32x128xf32>
    %19 = tpu.matmul %16, %18, %cst {dimension_numbers = #tpu.dot_dimension_numbers<[1], [0], [0], [1], [0, 0, 1, 1], [], []>} : vector<32x64xbf16>, vector<64x128xbf16>, vector<32x128xf32> -> vector<32x128xf32>
    %20 = arith.truncf %11 : vector<32x64xf32> to vector<32x64xbf16>
    %c1 = arith.constant 1 : index
    %c0_4 = arith.constant 0 : index
    %c0_5 = arith.constant 0 : index
    %21 = vector.load %arg2[%c1, %c0_4, %c0_5] : memref<3x64x128xbf16, #tpu.memory_space<vmem>>, vector<1x64x128xbf16>
    %22 = vector.shape_cast %21 : vector<1x64x128xbf16> to vector<64x128xbf16>
    %cst_6 = arith.constant dense<0.000000e+00> : vector<32x128xf32>
    %23 = tpu.matmul %20, %22, %cst_6 {dimension_numbers = #tpu.dot_dimension_numbers<[1], [0], [0], [1], [0, 0, 1, 1], [], []>} : vector<32x64xbf16>, vector<64x128xbf16>, vector<32x128xf32> -> vector<32x128xf32>
    %24 = arith.addf %19, %23 : vector<32x128xf32>
    %c31_i32_7 = arith.constant 31 : i32
    %25 = tpu.dynamic_rotate %11 by %c31_i32_7 dim 0 : vector<32x64xf32>, i32 -> vector<32x64xf32>
    %26 = vector.shape_cast %10 : vector<32x1xi1> to vector<32x1xi1>
    %27 = vector.broadcast %26 : vector<32x1xi1> to vector<32x64xi1>
    %28 = arith.select %27, %11, %25 : vector<32x64xi1>, vector<32x64xf32>
    %29 = arith.truncf %28 : vector<32x64xf32> to vector<32x64xbf16>
    %c2 = arith.constant 2 : index
    %c0_8 = arith.constant 0 : index
    %c0_9 = arith.constant 0 : index
    %30 = vector.load %arg2[%c2, %c0_8, %c0_9] : memref<3x64x128xbf16, #tpu.memory_space<vmem>>, vector<1x64x128xbf16>
    %31 = vector.shape_cast %30 : vector<1x64x128xbf16> to vector<64x128xbf16>
    %cst_10 = arith.constant dense<0.000000e+00> : vector<32x128xf32>
    %32 = tpu.matmul %29, %31, %cst_10 {dimension_numbers = #tpu.dot_dimension_numbers<[1], [0], [0], [1], [0, 0, 1, 1], [], []>} : vector<32x64xbf16>, vector<64x128xbf16>, vector<32x128xf32> -> vector<32x128xf32>
    %33 = arith.addf %24, %32 : vector<32x128xf32>
    %c0_11 = arith.constant 0 : index
    %c0_12 = arith.constant 0 : index
    %34 = vector.load %arg3[%c0_11, %c0_12] : memref<1x128xf32, #tpu.memory_space<vmem>>, vector<1x128xf32>
    %35 = vector.broadcast %34 : vector<1x128xf32> to vector<32x128xf32>
    %36 = arith.addf %33, %35 : vector<32x128xf32>
    %cst_13 = arith.constant 0.000000e+00 : f32
    %37 = vector.broadcast %cst_13 : f32 to vector<32x128xf32>
    %38 = arith.cmpf ogt, %36, %37 : vector<32x128xf32>
    %cst_14 = arith.constant 0.000000e+00 : f32
    %39 = vector.broadcast %cst_14 : f32 to vector<32x128xf32>
    %40 = arith.minimumf %36, %39 : vector<32x128xf32>
    %41 = math.exp %40 : vector<32x128xf32>
    %cst_15 = arith.constant 1.000000e+00 : f32
    %42 = vector.broadcast %cst_15 : f32 to vector<32x128xf32>
    %43 = arith.subf %41, %42 : vector<32x128xf32>
    %44 = arith.select %38, %36, %43 : vector<32x128xi1>, vector<32x128xf32>
    %c1_i32_16 = arith.constant 1 : i32
    %45 = tpu.dynamic_rotate %44 by %c1_i32_16 dim 0 : vector<32x128xf32>, i32 -> vector<32x128xf32>
    %46 = vector.shape_cast %5 : vector<32x1xi1> to vector<32x1xi1>
    %47 = vector.broadcast %46 : vector<32x1xi1> to vector<32x128xi1>
    %48 = arith.select %47, %44, %45 : vector<32x128xi1>, vector<32x128xf32>
    %49 = arith.truncf %48 : vector<32x128xf32> to vector<32x128xbf16>
    %c0_17 = arith.constant 0 : index
    %c0_18 = arith.constant 0 : index
    %c0_19 = arith.constant 0 : index
    %50 = vector.load %arg4[%c0_17, %c0_18, %c0_19] : memref<3x128x128xbf16, #tpu.memory_space<vmem>>, vector<1x128x128xbf16>
    %51 = vector.shape_cast %50 : vector<1x128x128xbf16> to vector<128x128xbf16>
    %cst_20 = arith.constant dense<0.000000e+00> : vector<32x128xf32>
    %52 = tpu.matmul %49, %51, %cst_20 {dimension_numbers = #tpu.dot_dimension_numbers<[1], [0], [0], [1], [0, 0, 1, 1], [], []>} : vector<32x128xbf16>, vector<128x128xbf16>, vector<32x128xf32> -> vector<32x128xf32>
    %53 = arith.truncf %44 : vector<32x128xf32> to vector<32x128xbf16>
    %c1_21 = arith.constant 1 : index
    %c0_22 = arith.constant 0 : index
    %c0_23 = arith.constant 0 : index
    %54 = vector.load %arg4[%c1_21, %c0_22, %c0_23] : memref<3x128x128xbf16, #tpu.memory_space<vmem>>, vector<1x128x128xbf16>
    %55 = vector.shape_cast %54 : vector<1x128x128xbf16> to vector<128x128xbf16>
    %cst_24 = arith.constant dense<0.000000e+00> : vector<32x128xf32>
    %56 = tpu.matmul %53, %55, %cst_24 {dimension_numbers = #tpu.dot_dimension_numbers<[1], [0], [0], [1], [0, 0, 1, 1], [], []>} : vector<32x128xbf16>, vector<128x128xbf16>, vector<32x128xf32> -> vector<32x128xf32>
    %57 = arith.addf %52, %56 : vector<32x128xf32>
    %c31_i32_25 = arith.constant 31 : i32
    %58 = tpu.dynamic_rotate %44 by %c31_i32_25 dim 0 : vector<32x128xf32>, i32 -> vector<32x128xf32>
    %59 = vector.shape_cast %10 : vector<32x1xi1> to vector<32x1xi1>
    %60 = vector.broadcast %59 : vector<32x1xi1> to vector<32x128xi1>
    %61 = arith.select %60, %44, %58 : vector<32x128xi1>, vector<32x128xf32>
    %62 = arith.truncf %61 : vector<32x128xf32> to vector<32x128xbf16>
    %c2_26 = arith.constant 2 : index
    %c0_27 = arith.constant 0 : index
    %c0_28 = arith.constant 0 : index
    %63 = vector.load %arg4[%c2_26, %c0_27, %c0_28] : memref<3x128x128xbf16, #tpu.memory_space<vmem>>, vector<1x128x128xbf16>
    %64 = vector.shape_cast %63 : vector<1x128x128xbf16> to vector<128x128xbf16>
    %cst_29 = arith.constant dense<0.000000e+00> : vector<32x128xf32>
    %65 = tpu.matmul %62, %64, %cst_29 {dimension_numbers = #tpu.dot_dimension_numbers<[1], [0], [0], [1], [0, 0, 1, 1], [], []>} : vector<32x128xbf16>, vector<128x128xbf16>, vector<32x128xf32> -> vector<32x128xf32>
    %66 = arith.addf %57, %65 : vector<32x128xf32>
    %c0_30 = arith.constant 0 : index
    %c0_31 = arith.constant 0 : index
    %67 = vector.load %arg5[%c0_30, %c0_31] : memref<1x128xf32, #tpu.memory_space<vmem>>, vector<1x128xf32>
    %68 = vector.broadcast %67 : vector<1x128xf32> to vector<32x128xf32>
    %69 = arith.addf %66, %68 : vector<32x128xf32>
    %cst_32 = arith.constant 0.000000e+00 : f32
    %70 = vector.broadcast %cst_32 : f32 to vector<32x128xf32>
    %71 = arith.cmpf ogt, %69, %70 : vector<32x128xf32>
    %cst_33 = arith.constant 0.000000e+00 : f32
    %72 = vector.broadcast %cst_33 : f32 to vector<32x128xf32>
    %73 = arith.minimumf %69, %72 : vector<32x128xf32>
    %74 = math.exp %73 : vector<32x128xf32>
    %cst_34 = arith.constant 1.000000e+00 : f32
    %75 = vector.broadcast %cst_34 : f32 to vector<32x128xf32>
    %76 = arith.subf %74, %75 : vector<32x128xf32>
    %77 = arith.select %71, %69, %76 : vector<32x128xi1>, vector<32x128xf32>
    %c0_35 = arith.constant 0 : index
    %c0_36 = arith.constant 0 : index
    %c0_37 = arith.constant 0 : index
    %78 = vector.load %arg6[%c0_35, %c0_36, %c0_37] : memref<2x8x32xf32, #tpu.memory_space<vmem>>, vector<1x8x32xf32>
    %79 = vector.shape_cast %78 : vector<1x8x32xf32> to vector<8x32xf32>
    %cst_38 = arith.constant dense<0.000000e+00> : vector<8x128xf32>
    %80 = tpu.matmul %79, %77, %cst_38 {dimension_numbers = #tpu.dot_dimension_numbers<[1], [0], [0], [1], [0, 0, 1, 1], [], []>} : vector<8x32xf32>, vector<32x128xf32>, vector<8x128xf32> -> vector<8x128xf32>
    %c0_39 = arith.constant 0 : index
    %c0_40 = arith.constant 0 : index
    %c0_41 = arith.constant 0 : index
    %81 = vector.load %arg7[%c0_39, %c0_40, %c0_41] : memref<2x128x128xf32, #tpu.memory_space<vmem>>, vector<1x128x128xf32>
    %82 = vector.shape_cast %81 : vector<1x128x128xf32> to vector<128x128xf32>
    %cst_42 = arith.constant dense<0.000000e+00> : vector<8x128xf32>
    %83 = tpu.matmul %80, %82, %cst_42 {dimension_numbers = #tpu.dot_dimension_numbers<[1], [0], [0], [1], [0, 0, 1, 1], [], []>} : vector<8x128xf32>, vector<128x128xf32>, vector<8x128xf32> -> vector<8x128xf32>
    %c1_43 = arith.constant 1 : index
    %c0_44 = arith.constant 0 : index
    %c0_45 = arith.constant 0 : index
    %84 = vector.load %arg6[%c1_43, %c0_44, %c0_45] : memref<2x8x32xf32, #tpu.memory_space<vmem>>, vector<1x8x32xf32>
    %85 = vector.shape_cast %84 : vector<1x8x32xf32> to vector<8x32xf32>
    %cst_46 = arith.constant dense<0.000000e+00> : vector<8x128xf32>
    %86 = tpu.matmul %85, %77, %cst_46 {dimension_numbers = #tpu.dot_dimension_numbers<[1], [0], [0], [1], [0, 0, 1, 1], [], []>} : vector<8x32xf32>, vector<32x128xf32>, vector<8x128xf32> -> vector<8x128xf32>
    %c1_47 = arith.constant 1 : index
    %c0_48 = arith.constant 0 : index
    %c0_49 = arith.constant 0 : index
    %87 = vector.load %arg7[%c1_47, %c0_48, %c0_49] : memref<2x128x128xf32, #tpu.memory_space<vmem>>, vector<1x128x128xf32>
    %88 = vector.shape_cast %87 : vector<1x128x128xf32> to vector<128x128xf32>
    %cst_50 = arith.constant dense<0.000000e+00> : vector<8x128xf32>
    %89 = tpu.matmul %86, %88, %cst_50 {dimension_numbers = #tpu.dot_dimension_numbers<[1], [0], [0], [1], [0, 0, 1, 1], [], []>} : vector<8x128xf32>, vector<128x128xf32>, vector<8x128xf32> -> vector<8x128xf32>
    %90 = arith.addf %83, %89 : vector<8x128xf32>
    %c0_51 = arith.constant 0 : index
    %c0_52 = arith.constant 0 : index
    %91 = vector.load %arg8[%c0_51, %c0_52] : memref<8x128xf32, #tpu.memory_space<vmem>>, vector<8x128xf32>
    tpu.vector_store %arg8[%c0_51, %c0_52], %90 {strides = array<i32>} : memref<8x128xf32, #tpu.memory_space<vmem>>, vector<8x128xf32>,
    return
  }
  func.func @transform_0(%arg0: i32) -> (i32, i32) {
    %c0_i32 = arith.constant 0 : i32
    %c0_i32_0 = arith.constant 0 : i32
    %c0_i32_1 = arith.constant 0 : i32
    return %c0_i32, %c0_i32_0 : i32, i32
  }
  func.func @transform_1(%arg0: i32) -> (i32, i32, i32) {
    %c0_i32 = arith.constant 0 : i32
    %c0_i32_0 = arith.constant 0 : i32
    %c0_i32_1 = arith.constant 0 : i32
    %c0_i32_2 = arith.constant 0 : i32
    return %c0_i32, %c0_i32_0, %c0_i32_1 : i32, i32, i32
  }
  func.func @transform_2(%arg0: i32) -> (i32, i32) {
    %c0_i32 = arith.constant 0 : i32
    %c0_i32_0 = arith.constant 0 : i32
    %c0_i32_1 = arith.constant 0 : i32
    return %c0_i32, %c0_i32_0 : i32, i32
  }
  func.func @transform_3(%arg0: i32) -> (i32, i32, i32) {
    %c0_i32 = arith.constant 0 : i32
    %c0_i32_0 = arith.constant 0 : i32
    %c0_i32_1 = arith.constant 0 : i32
    %c0_i32_2 = arith.constant 0 : i32
    return %c0_i32, %c0_i32_0, %c0_i32_1 : i32, i32, i32
  }
  func.func @transform_4(%arg0: i32) -> (i32, i32) {
    %c0_i32 = arith.constant 0 : i32
    %c0_i32_0 = arith.constant 0 : i32
    %c0_i32_1 = arith.constant 0 : i32
    return %c0_i32, %c0_i32_0 : i32, i32
  }
  func.func @transform_5(%arg0: i32) -> (i32, i32, i32) {
    %c0_i32 = arith.constant 0 : i32
    %c0_i32_0 = arith.constant 0 : i32
    %c0_i32_1 = arith.constant 0 : i32
    %c0_i32_2 = arith.constant 0 : i32
    return %c0_i32, %c0_i32_0, %c0_i32_1 : i32, i32, i32
  }
  func.func @transform_6(%arg0: i32) -> (i32, i32, i32) {
    %c0_i32 = arith.constant 0 : i32
    %c0_i32_0 = arith.constant 0 : i32
    %c0_i32_1 = arith.constant 0 : i32
    %c0_i32_2 = arith.constant 0 : i32
    return %c0_i32, %c0_i32_0, %c0_i32_1 : i32, i32, i32
  }
  func.func @transform_7(%arg0: i32) -> (i32, i32) {
    %c0_i32 = arith.constant 0 : i32
    %c0_i32_0 = arith.constant 0 : i32
    %c0_i32_1 = arith.constant 0 : i32
    return %c0_i32, %c0_i32_0 : i32, i32
  }
}

</mosaic_0001>

<bundles_post_ra>
// kernel: conv_block_forward.1
= control target key start
LH: loop header
LB: loop body
LE: loop exit
PB: predicated region body
PF: predicated region fallthrough
CT: control target
= control target key end

     0   :  { %v27_v0 = vlaneseq  ;;  %vm126_vm1 = vcmask 523264   ;;  %vm1682_vm11 = vmmov 0   ;;  %s2073_s1 = inlined_call_operand.vmem [shape: bf16[3,64,128], index: 1, kind: input, shape index: {}]   ;;  %s2074_s0 = inlined_call_operand.vmem [shape: f32[32,64], index: 0, kind: input, shape index: {}]   ;;  %s2075_s3 = inlined_call_operand.vmem [shape: bf16[3,128,128], index: 3, kind: input, shape index: {}]   ;;  %s2076_s2 = inlined_call_operand.vmem [shape: f32[1,128], index: 2, kind: input, shape index: {}]   ;;  %s2077_s4 = inlined_call_operand.vmem [shape: f32[1,128], index: 4, kind: input, shape index: {}]   ;;  %s2078_s5 = inlined_call_operand.vmem [shape: f32[2,8,32], index: 5, kind: input, shape index: {}]   ;;  %s2079_s6 = inlined_call_operand.vmem [shape: f32[2,128,128], index: 6, kind: input, shape index: {}]   ;;  %s2080_s7 = inlined_call_operand.vmem [shape: f32[8,128], index: 7, kind: output, shape index: {}]  }
   0x1   :  { %v1629_v1 = vld [vmem:[%s2073_s1] sm:$0xff]   ;;  %v1630_v2 = vld [vmem:[%s2073_s1 + $0x8] sm:$0xff]   ;;  %v1631_v4 = vld [vmem:[%s2073_s1 + $0x10] sm:$0xff]  }
   0x2   :  { %v1730_v3 = vshrl.u32 %v27_v0, 7  ;;  %1372 = vmatprep.subr.bf16.mxu0 %v1629_v1  ;;  %v1633_v5 = vld [vmem:[%s2073_s1 + $0x20] sm:$0xff]   ;;  %v57_v7 = vld [vmem:[%s2074_s0 + $0x8] sm:$0xff]  ;;  %v1749_v8 = vld [vmem:[%s2074_s0 + $0x18] sm:$0xff] }
   0x3   :  { %1373 = vmatpush3.bf16.msra.mxu0 %v1629_v1  ;;  %v1741_v6 = vld [vmem:[%s2074_s0] sm:$0xff]  ;;  %1360 = vmatprep.subr.bf16.mxu1 %v1633_v5  ;;  %v61_v11 = vrot.slane %v57_v7, 7  ;;  %v63_v12 = vrot.slane %v1749_v8, 7  ;;  %v1632_v13 = vld [vmem:[%s2073_s1 + $0x18] sm:$0xff]   ;;  %v1635_v19 = vld [vmem:[%s2073_s1 + $0x28] sm:$0xff]   ;;  %v262_v26 = vrot.slane %v57_v7, 1 }
   0x4   :  { %1374 = vmatprep.subr.bf16.mxu0 %v1630_v2  ;;  %vm64_vm0 = vcmp.lt.s32.totalorder %v1730_v3, 1  ;;  %v1753_v9 = vadd.s32 16, %v1730_v3  ;;  %vm32_vm2 = vcmp.eq.s32.totalorder %v1730_v3, 0  ;;  %v60_v10 = vrot.slane %v1741_v6, 7  ;;  %1361 = vmatpush3.bf16.msra.mxu1 %v1633_v5  ;;  %v58_v20 = vld [vmem:[%s2074_s0 + $0x10] sm:$0xff]  ;;  %v1634_v24 = vld [vmem:[%s2073_s1 + $0x40] sm:$0xff]  }
   0x5   :  { %v91_v14 = vpack.c.bf16 %v57_v7, %v1741_v6  ;;  %v1763_v15 = vadd.s32 8, %v1730_v3  ;;  %v261_v18 = vrot.slane %v1741_v6, 1  ;;  %vm265_vm3 = vcmp.lt.s32.totalorder %v1730_v3, 7  ;;  %1362 = vmatprep.subr.bf16.mxu1 %v1635_v19  ;;  %v1637_v25 = vld [vmem:[%s2073_s1 + $0x30] sm:$0xff]   ;;  %v1639_v31 = vld [vmem:[%s2073_s1 + $0x38] sm:$0xff]   ;;  %v1636_v37 = vld [vmem:[%s2073_s1 + $0x48] sm:$0xff]  }
   0x6   :  { %v67_v16 = vsel %vm64_vm0, %v60_v10, %v61_v11  ;;  %v68_v17 = vsel %vm64_vm0, %v63_v12, %v60_v10  ;;  %vm38_vm4 = vcmp.eq.s32.totalorder %v1753_v9, 16  ;;  %v62_v22 = vrot.slane %v58_v20, 7  ;;  %v1641_v39 = vld [vmem:[%s2075_s3 + $0x40] sm:$0xff]   ;;  %v1638_v41 = vld [vmem:[%s2073_s1 + $0x50] sm:$0xff]   ;;  %v1640_v43 = vld [vmem:[%s2073_s1 + $0x58] sm:$0xff]  }
   0x7   :  { %1375 = vmatpush3.bf16.msra.mxu0 %v1630_v2  ;;  %v77_v21 = vsel %vm32_vm2, %v1741_v6, %v68_v17  ;;  %1368 = vmatprep.mubr.msk.bf16.mxu1 %vm126_vm1, %v91_v14  ;;  %vm45_vm5 = vcmp.eq.s32.totalorder %v1763_v15, 15  ;;  %v263_v29 = vrot.slane %v58_v20, 1  ;;  %v1800_v32 = vadd.s32 24, %v1730_v3  ;;  %v1642_v48 = vld [vmem:[%s2075_s3 + $0x48] sm:$0xff]   ;;  %v1643_v49 = vld [vmem:[%s2075_s3 + $0x50] sm:$0xff]   ;;  %v1644_v50 = vld [vmem:[%s2075_s3 + $0x58] sm:$0xff]  }
   0x8   :  { %1376 = vmatprep.subr.bf16.mxu0 %v1631_v4  ;;  %v81_v23 = vpack.c.bf16 %v67_v16, %v77_v21  ;;  %v65_v27 = vsel %vm64_vm0, %v62_v22, %v63_v12  ;;  %v66_v28 = vsel %vm64_vm0, %v61_v11, %v62_v22  ;;  %1363 = vmatpush3.bf16.msra.mxu1 %v1635_v19  ;;  %v264_v35 = vrot.slane %v1749_v8, 1  ;;  %v1645_v51 = vld [vmem:[%s2075_s3 + $0x60] sm:$0xff]   ;;  %v1646_v52 = vld [vmem:[%s2075_s3 + $0x68] sm:$0xff]   ;;  %v1647_v53 = vld [vmem:[%s2075_s3 + $0x70] sm:$0xff]  }
   0x9   :  { %v79_v30 = vsel %vm38_vm4, %v58_v20, %v66_v28  ;;  %1364 = vmatprep.subr.bf16.mxu1 %v1637_v25  ;;  %v267_v33 = vsel %vm265_vm3, %v262_v26, %v263_v29  ;;  %v268_v34 = vsel %vm265_vm3, %v261_v18, %v262_v26  ;;  %vm51_vm6 = vcmp.eq.s32.totalorder %v1800_v32, 31  ;;  %v1648_v54 = vld [vmem:[%s2075_s3 + $0x78] sm:$0xff]   ;;  %v1858_v55 = vld [vmem:[%s2075_s3] sm:$0xff]   ;;  %v1651_v9 = vld [vmem:[%s2075_s3 + $0x10] sm:$0xff]  }
   0xa   :  { %1380 = vmatprep.mubr.msk.bf16.mxu0 %vm126_vm1, %v81_v23  ;;  %v82_v36 = vpack.c.bf16 %v65_v27, %v79_v30  ;;  %v279_v38 = vsel %vm45_vm5, %v57_v7, %v267_v33  ;;  %v92_v42 = vpack.c.bf16 %v1749_v8, %v58_v20  ;;  %v269_v44 = vsel %vm265_vm3, %v264_v35, %v261_v18  ;;  %v1183_v61 = vld [vmem:[%s2076_s2] ss:$0 sm:$0xff]  ;;  %v1652_v3 = vld [vmem:[%s2075_s3 + $0x18] sm:$0xff]   ;;  %v1654_v32 = vld [vmem:[%s2075_s3 + $0x28] sm:$0xff]  }
   0xb   :  { %1377 = vmatpush3.bf16.msra.mxu0 %v1631_v4  ;;  %v282_v40 = vpack.c.bf16 %v279_v38, %v268_v34  ;;  %v266_v45 = vsel %vm265_vm3, %v263_v29, %v264_v35  ;;  %v281_v46 = vsel %vm51_vm6, %v1749_v8, %v269_v44  ;;  %v1650_v44 = vld [vmem:[%s2075_s3 + $0x8] sm:$0xff]   ;;  %v1653_v15 = vld [vmem:[%s2075_s3 + $0x20] sm:$0xff]  }
   0xc   :  { %1378 = vmatprep.subr.bf16.mxu0 %v1632_v13  ;;  %1365 = vmatpush3.bf16.msra.mxu1 %v1637_v25  ;;  %v283_v47 = vpack.c.bf16 %v281_v46, %v266_v45 }
   0xd   :  { %1366 = vmatprep.subr.bf16.mxu1 %v1639_v31 }
   0xf   :  { %1379 = vmatpush3.bf16.msra.mxu0 %v1632_v13 }
  0x10   :  { %1384 = vmatprep.subr.bf16.mxu0 %v1634_v24  ;;  %1367 = vmatpush3.bf16.msra.mxu1 %v1639_v31 }
  0x11   :  { %1396 = vmatprep.subr.bf16.mxu1 %v1641_v39 }
  0x12   :  { %1381 = vmatmul.mubr.msk.bf16.vlgmr.msra.gmra.mrb[0].mxu0 %vm126_vm1, %v82_v36 }
  0x13   :  { %1385 = vmatpush3.bf16.msra.mxu0 %v1634_v24  ;;  %1392 = vmatprep.mubr.msk.bf16.mxu0 %vm126_vm1, %v282_v40 }
  0x14   :  { %1386 = vmatprep.subr.bf16.mxu0 %v1636_v37  ;;  %1369 = vmatmul.mubr.msk.bf16.vlgmr.msra.gmra.mrb[0].mxu1 %vm126_vm1, %v92_v42 }
  0x15   :  { %1397 = vmatpush3.bf16.msra.mxu1 %v1641_v39 }
  0x16   :  { %1398 = vmatprep.subr.bf16.mxu1 %v1642_v48 }
  0x17   :  { %1387 = vmatpush3.bf16.msra.mxu0 %v1636_v37 }
  0x18   :  { %1388 = vmatprep.subr.bf16.mxu0 %v1638_v41 }
  0x19   :  { %1399 = vmatpush3.bf16.msra.mxu1 %v1642_v48 }
  0x1a   :  { %1400 = vmatprep.subr.bf16.mxu1 %v1643_v49 }
  0x1b   :  { %1389 = vmatpush3.bf16.msra.mxu0 %v1638_v41 }
  0x1c   :  { %1390 = vmatprep.subr.bf16.mxu0 %v1640_v43 }
  0x1d   :  { %1401 = vmatpush3.bf16.msra.mxu1 %v1643_v49 }
  0x1e   :  { %1402 = vmatprep.subr.bf16.mxu1 %v1644_v50 }
  0x1f   :  { %1391 = vmatpush3.bf16.msra.mxu0 %v1640_v43 }
  0x21   :  { %1403 = vmatpush3.bf16.msra.mxu1 %v1644_v50 }
  0x22   :  { %1393 = vmatmul.mubr.msk.bf16.vlgmr.msra.gmra.mrb[0].mxu0 %vm126_vm1, %v283_v47  ;;  %1404 = vmatprep.subr.bf16.mxu1 %v1645_v51 }
  0x25   :  { %1405 = vmatpush3.bf16.msra.mxu1 %v1645_v51 }
  0x26   :  { %1406 = vmatprep.subr.bf16.mxu1 %v1646_v52 }
  0x29   :  { %1407 = vmatpush3.bf16.msra.mxu1 %v1646_v52 }
  0x2a   :  { %1408 = vmatprep.subr.bf16.mxu1 %v1647_v53 }
  0x2d   :  { %1409 = vmatpush3.bf16.msra.mxu1 %v1647_v53 }
  0x2e   :  { %1410 = vmatprep.subr.bf16.mxu1 %v1648_v54 }
  0x31   :  { %1411 = vmatpush3.bf16.msra.mxu1 %v1648_v54 }
  0x32   :  { %1416 = vmatprep.subr.bf16.mxu1 %v1858_v55 }
  0xe7   :  { %v1370_v56 = vpop.f32.mrb[0].mxu1 }
  0xe8   :  { %v167_v57 = vpop.f32.mrb[1].mxu1 }
  0xe9   :  { %v1371_v58 = vpop.f32.mrb[2].mxu1 }
  0xea   :  { %v170_v59 = vpop.f32.mrb[3].mxu1 }
  0xf5   :  { %v1394_v60 = vpop.f32.mrb[0].mxu0 }
  0xf6   :  { %v1608_v62 = vadd.f32 %v1394_v60, %v1370_v56  ;;  %v357_v63 = vpop.f32.mrb[1].mxu0 }
  0xf7   :  { %v1609_v0 = vadd.f32 %v357_v63, %v167_v57  ;;  %v1395_v1 = vpop.f32.mrb[2].mxu0  ;;  %v1658_v63 = vld [vmem:[%s2075_s3 + $0x88] sm:$0xff]  }
  0xf8   :  { %v385_v2 = vadd.f32 %v1608_v62, %v1183_v61  ;;  %v1610_v4 = vadd.f32 %v1395_v1, %v1371_v58  ;;  %v360_v5 = vpop.f32.mrb[3].mxu0  ;;  %v1657_v62 = vld [vmem:[%s2075_s3 + $0x80] sm:$0xff]   ;;  %v1660_v1 = vld [vmem:[%s2075_s3 + $0x98] sm:$0xff]  }
  0xf9   :  { %v383_v6 = vadd.f32 %v1609_v0, %v1183_v61  ;;  %v1611_v7 = vadd.f32 %v360_v5, %v170_v59  ;;  %v1659_v0 = vld [vmem:[%s2075_s3 + $0x90] sm:$0xff]  }
  0xfa   :  { %v393_v8 = vmin.f32 %v385_v2, 0.0  ;;  %v386_v10 = vadd.f32 %v1610_v4, %v1183_v61  ;;  %vm389_vm7 = vcmp.gt.f32.partialorder %v385_v2, 0.0  ;;  %v1662_v4 = vld [vmem:[%s2075_s3 + $0xa8] sm:$0xff]   ;;  %v1663_v5 = vld [vmem:[%s2075_s3 + $0xb0] sm:$0xff]  }
  0xfb   :  { %v391_v11 = vmin.f32 %v383_v6, 0.0  ;;  %v384_v12 = vadd.f32 %v1611_v7, %v1183_v61  ;;  %vm387_vm8 = vcmp.gt.f32.partialorder %v383_v6, 0.0  ;;  %v1656_v61 = vld [vmem:[%s2075_s3 + $0x38] sm:$0xff]   ;;  %v1681_v7 = vmov 0.0|0.0  }
  0xfc   :  { %v399_v13 = vmul.f32 1.442695, %v393_v8  ;;  %v394_v14 = vmin.f32 %v386_v10, 0.0  ;;  %vm390_vm9 = vcmp.gt.f32.partialorder %v386_v10, 0.0  ;;  %1548 = vmatprep.subr.bf16.mxu0 %v1681_v7  ;;  %v1683_v8 = vmov 0.0  }
  0xfd   :  { %v395_v16 = vmul.f32 1.442695, %v391_v11  ;;  %v392_v17 = vmin.f32 %v384_v12, 0.0  ;;  %vm388_vm10 = vcmp.gt.f32.partialorder %v384_v12, 0.0  ;;  %1464 = vmatprep.mubr.msk.f32.mxu0 %vm1682_vm11, %v1683_v8 }
  0xfe   :  { %1665 = vpow2.f32 %v399_v13  ;;  %v401_v18 = vmul.f32 1.442695, %v394_v14 }
  0xff   :  { %1667 = vpow2.f32 %v395_v16  ;;  %v397_v19 = vmul.f32 1.442695, %v392_v17 }
 0x100   :  { %1669 = vpow2.f32 %v401_v18 }
 0x101   :  { %1671 = vpow2.f32 %v397_v19 }
 0x108   :  { %v1666_v20 = vpop.eup %1665 }
 0x109   :  { %v1668_v21 = vpop.eup %1667  ;;  %v1186_v22 = vadd.f32 -1.0, %v1666_v20 }
 0x10a   :  { %v1670_v23 = vpop.eup %1669  ;;  %v1184_v24 = vadd.f32 -1.0, %v1668_v21 }
 0x10b   :  { %v1672_v25 = vpop.eup %1671  ;;  %v409_v26 = vsel %vm389_vm7, %v385_v2, %v1186_v22  ;;  %v1187_v27 = vadd.f32 -1.0, %v1670_v23  ;;  %v1661_v2 = vld [vmem:[%s2075_s3 + $0xa0] sm:$0xff]  }
 0x10c   :  { %v413_v28 = vrot.slane %v409_v26, 7  ;;  %v407_v29 = vsel %vm387_vm8, %v383_v6, %v1184_v24  ;;  %v1185_v30 = vadd.f32 -1.0, %v1672_v25  ;;  %v656_v31 = vrot.slane %v409_v26, 1  ;;  %v1664_v6 = vld [vmem:[%s2075_s3 + $0xb8] sm:$0xff]  }
 0x10d   :  { %v410_v33 = vsel %vm390_vm9, %v386_v10, %v1187_v27  ;;  %v411_v34 = vrot.slane %v407_v29, 7  ;;  %v654_v35 = vrot.slane %v407_v29, 1  ;;  %v1244_v10 = vld [vmem:[%s2077_s4] ss:$0 sm:$0xff] }
 0x10e   :  { %v414_v36 = vrot.slane %v410_v33, 7  ;;  %v657_v37 = vrot.slane %v410_v33, 1  ;;  %v408_v38 = vsel %vm388_vm10, %v384_v12, %v1185_v30  ;;  %v442_v39 = vpack.c.bf16 %v410_v33, %v409_v26 }
 0x10f   :  { %v441_v40 = vpack.c.bf16 %v408_v38, %v407_v29  ;;  %v412_v41 = vrot.slane %v408_v38, 7  ;;  %v655_v42 = vrot.slane %v408_v38, 1 }
 0x110   :  { %v418_v43 = vsel %vm64_vm0, %v414_v36, %v411_v34  ;;  %v415_v45 = vsel %vm64_vm0, %v413_v28, %v414_v36  ;;  %v1873_v46 = vsel %vm265_vm3, %v656_v31, %v657_v37  ;;  %v661_v47 = vsel %vm265_vm3, %v657_v37, %v654_v35 }
 0x111   :  { %1412 = vmatprep.mubr.bf16.mxu1 %v441_v40  ;;  %v417_v48 = vsel %vm64_vm0, %v411_v34, %v412_v41  ;;  %v419_v49 = vsel %vm32_vm2, %v407_v29, %v418_v43  ;;  %v416_v50 = vsel %vm64_vm0, %v412_v41, %v413_v28  ;;  %v659_v51 = vsel %vm265_vm3, %v655_v42, %v656_v31  ;;  %v821_v43 = vld [vmem:[%s2078_s5] sm:$0xff] }
 0x112   :  { %1413 = vmatmul.mubr.bf16.vlgmr.msra.gmra.mrb[4].mxu1 %v442_v39  ;;  %v423_v52 = vpack.c.bf16 %v417_v48, %v419_v49  ;;  %v421_v53 = vsel %vm38_vm4, %v409_v26, %v416_v50  ;;  %v660_v54 = vsel %vm265_vm3, %v654_v35, %v655_v42  ;;  %v663_v56 = vsel %vm45_vm5, %v408_v38, %v659_v51  ;;  %v1254_v48 = vld [vmem:[%s2079_s6 + $0x90] sm:$0xff]  ;;  %v1255_v49 = vld [vmem:[%s2079_s6 + $0x98] sm:$0xff]  ;;  %v1256_v51 = vld [vmem:[%s2079_s6 + $0xa0] sm:$0xff] }
 0x113   :  { %1417 = vmatpush3.bf16.msra.mxu1 %v1858_v55  ;;  %v424_v57 = vpack.c.bf16 %v415_v45, %v421_v53  ;;  %v666_v58 = vpack.c.bf16 %v663_v56, %v660_v54  ;;  %v665_v59 = vsel %vm51_vm6, %v410_v33, %v661_v47  ;;  %v1655_v55 = vld [vmem:[%s2075_s3 + $0x30] sm:$0xff]   ;;  %vm822_vm0 = vcmask 261120   ;;  %v1253_v45 = vld [vmem:[%s2079_s6 + $0x88] sm:$0xff]  ;;  %v1259_v56 = vld [vmem:[%s2079_s6 + $0xb8] sm:$0xff] }
 0x114   :  { %1432 = vmatprep.mubr.bf16.mxu1 %v423_v52  ;;  %1418 = vmatprep.subr.bf16.mxu1 %v1650_v44  ;;  %v667_v60 = vpack.c.bf16 %v665_v59, %v1873_v46  ;;  %v1250_v46 = vld [vmem:[%s2078_s5 + $0x8] sm:$0xff]  ;;  %v1564_v50 = vpack.c.bf16 %v1255_v49, %v1254_v48  ;;  %v1258_v54 = vld [vmem:[%s2079_s6 + $0xb0] sm:$0xff] }
 0x115   :  { %v1257_v52 = vld [vmem:[%s2079_s6 + $0xa8] sm:$0xff] }
 0x116   :  { %v1567_v53 = vpack.c.bf16 %v1257_v52, %v1256_v51  ;;  %v1261_v59 = vld [vmem:[%s2079_s6 + $0xc8] sm:$0xff] }
 0x117   :  { %1419 = vmatpush3.bf16.msra.mxu1 %v1650_v44  ;;  %v1252_v44 = vld [vmem:[%s2079_s6 + $0x80] sm:$0xff] }
 0x118   :  { %1420 = vmatprep.subr.bf16.mxu1 %v1651_v9  ;;  %v1561_v47 = vpack.c.bf16 %v1253_v45, %v1252_v44 }
 0x11b   :  { %1421 = vmatpush3.bf16.msra.mxu1 %v1651_v9 }
 0x11c   :  { %1422 = vmatprep.subr.bf16.mxu1 %v1652_v3 }
 0x11f   :  { %1423 = vmatpush3.bf16.msra.mxu1 %v1652_v3  ;;  %v1263_v3 = vld [vmem:[%s2079_s6 + $0xd8] sm:$0xff] }
 0x120   :  { %1424 = vmatprep.subr.bf16.mxu1 %v1653_v15 }
 0x123   :  { %1425 = vmatpush3.bf16.msra.mxu1 %v1653_v15 }
 0x124   :  { %1426 = vmatprep.subr.bf16.mxu1 %v1654_v32 }
 0x127   :  { %1427 = vmatpush3.bf16.msra.mxu1 %v1654_v32  ;;  %v1264_v32 = vld [vmem:[%s2079_s6 + $0xe0] sm:$0xff] }
 0x128   :  { %1428 = vmatprep.subr.bf16.mxu1 %v1655_v55 }
 0x12b   :  { %1429 = vmatpush3.bf16.msra.mxu1 %v1655_v55  ;;  %v1265_v55 = vld [vmem:[%s2079_s6 + $0xe8] sm:$0xff] }
 0x12c   :  { %1430 = vmatprep.subr.bf16.mxu1 %v1656_v61 }
 0x12f   :  { %1431 = vmatpush3.bf16.msra.mxu1 %v1656_v61  ;;  %v1579_v61 = vpack.c.bf16 %v1265_v55, %v1264_v32 }
 0x130   :  { %1436 = vmatprep.subr.bf16.mxu1 %v1657_v62 }
 0x132   :  { %1433 = vmatmul.mubr.bf16.vlgmr.msra.gmra.mrb[4].mxu1 %v424_v57  ;;  %v1570_v57 = vpack.c.bf16 %v1259_v56, %v1258_v54 }
 0x133   :  { %1437 = vmatpush3.bf16.msra.mxu1 %v1657_v62  ;;  %1452 = vmatprep.mubr.bf16.mxu1 %v666_v58  ;;  %v1260_v58 = vld [vmem:[%s2079_s6 + $0xc0] sm:$0xff]  ;;  %v1266_v62 = vld [vmem:[%s2079_s6 + $0xf0] sm:$0xff] }
 0x134   :  { %1438 = vmatprep.subr.bf16.mxu1 %v1658_v63  ;;  %v1573_v9 = vpack.c.bf16 %v1261_v59, %v1260_v58 }
 0x137   :  { %1439 = vmatpush3.bf16.msra.mxu1 %v1658_v63  ;;  %v1267_v63 = vld [vmem:[%s2079_s6 + $0xf8] sm:$0xff] }
 0x138   :  { %1440 = vmatprep.subr.bf16.mxu1 %v1659_v0 }
 0x13b   :  { %1441 = vmatpush3.bf16.msra.mxu1 %v1659_v0  ;;  %v1582_v0 = vpack.c.bf16 %v1267_v63, %v1266_v62 }
 0x13c   :  { %1442 = vmatprep.subr.bf16.mxu1 %v1660_v1 }
 0x13f   :  { %1443 = vmatpush3.bf16.msra.mxu1 %v1660_v1 }
 0x140   :  { %1444 = vmatprep.subr.bf16.mxu1 %v1661_v2 }
 0x143   :  { %1445 = vmatpush3.bf16.msra.mxu1 %v1661_v2 }
 0x144   :  { %1446 = vmatprep.subr.bf16.mxu1 %v1662_v4 }
 0x147   :  { %1447 = vmatpush3.bf16.msra.mxu1 %v1662_v4  ;;  %v896_v4 = vld [vmem:[%s2079_s6] sm:$0xff] }
 0x148   :  { %1448 = vmatprep.subr.bf16.mxu1 %v1663_v5 }
 0x14b   :  { %1449 = vmatpush3.bf16.msra.mxu1 %v1663_v5  ;;  %v897_v5 = vld [vmem:[%s2079_s6 + $0x8] sm:$0xff] }
 0x14c   :  { %1450 = vmatprep.subr.bf16.mxu1 %v1664_v6 }
 0x14f   :  { %1451 = vmatpush3.bf16.msra.mxu1 %v1664_v6  ;;  %v1585_v6 = vpack.c.bf16 %v897_v5, %v896_v4 }
 0x152   :  { %1453 = vmatmul.mubr.bf16.vlgmr.msra.gmra.mrb[4].mxu1 %v667_v60  ;;  %v1262_v60 = vld [vmem:[%s2079_s6 + $0xd0] sm:$0xff] }
 0x153   :  { %v1576_v15 = vpack.c.bf16 %v1263_v3, %v1262_v60 }
 0x225   :  { %v1454_v11 = vpop.f32.mrb[4].mxu1 }
 0x226   :  { %v795_v12 = vadd.f32 %v1454_v11, %v1244_v10  ;;  %v767_v13 = vpop.f32.mrb[5].mxu1  ;;  %v899_v11 = vld [vmem:[%s2079_s6 + $0x18] sm:$0xff] }
 0x227   :  { %v793_v14 = vadd.f32 %v1244_v10, %v767_v13  ;;  %v1455_v16 = vpop.f32.mrb[6].mxu1 }
 0x228   :  { %v803_v17 = vmin.f32 %v795_v12, 0.0  ;;  %v796_v18 = vadd.f32 %v1455_v16, %v1244_v10  ;;  %v770_v19 = vpop.f32.mrb[7].mxu1  ;;  %vm799_vm12 = vcmp.gt.f32.partialorder %v795_v12, 0.0  ;;  %v900_v16 = vld [vmem:[%s2079_s6 + $0x20] sm:$0xff] }
 0x229   :  { %v801_v20 = vmin.f32 %v793_v14, 0.0  ;;  %v794_v21 = vadd.f32 %v1244_v10, %v770_v19  ;;  %vm797_vm14 = vcmp.gt.f32.partialorder %v793_v14, 0.0  ;;  %v898_v10 = vld [vmem:[%s2079_s6 + $0x10] sm:$0xff] }
 0x22a   :  { %v809_v22 = vmul.f32 1.442695, %v803_v17  ;;  %v804_v23 = vmin.f32 %v796_v18, 0.0  ;;  %vm800_vm13 = vcmp.gt.f32.partialorder %v796_v18, 0.0  ;;  %v901_v17 = vld [vmem:[%s2079_s6 + $0x28] sm:$0xff]  ;;  %v902_v19 = vld [vmem:[%s2079_s6 + $0x30] sm:$0xff] }
 0x22b   :  { %v805_v24 = vmul.f32 1.442695, %v801_v20  ;;  %v802_v25 = vmin.f32 %v794_v21, 0.0  ;;  %vm798_vm15 = vcmp.gt.f32.partialorder %v794_v21, 0.0 }
 0x22c   :  { %1673 = vpow2.f32 %v809_v22  ;;  %v811_v26 = vmul.f32 1.442695, %v804_v23  ;;  %v905_v22 = vld [vmem:[%s2079_s6 + $0x48] sm:$0xff] }
 0x22d   :  { %1675 = vpow2.f32 %v805_v24  ;;  %v807_v27 = vmul.f32 1.442695, %v802_v25  ;;  %v906_v24 = vld [vmem:[%s2079_s6 + $0x50] sm:$0xff]  ;;  %v907_v25 = vld [vmem:[%s2079_s6 + $0x58] sm:$0xff] }
 0x22e   :  { %1677 = vpow2.f32 %v811_v26  ;;  %v1600_v26 = vpack.c.bf16 %v907_v25, %v906_v24 }
 0x22f   :  { %1679 = vpow2.f32 %v807_v27  ;;  %v908_v27 = vld [vmem:[%s2079_s6 + $0x60] sm:$0xff] }
 0x236   :  { %v1674_v28 = vpop.eup %1673 }
 0x237   :  { %v1676_v29 = vpop.eup %1675  ;;  %v1247_v30 = vadd.f32 -1.0, %v1674_v28  ;;  %v909_v28 = vld [vmem:[%s2079_s6 + $0x68] sm:$0xff] }
 0x238   :  { %v1678_v31 = vpop.eup %1677  ;;  %v1245_v33 = vadd.f32 -1.0, %v1676_v29  ;;  %v1603_v29 = vpack.c.bf16 %v909_v28, %v908_v27 }
 0x239   :  { %v1680_v34 = vpop.eup %1679  ;;  %v1248_v35 = vadd.f32 -1.0, %v1678_v31  ;;  %v819_v37 = vsel %vm799_vm12, %v795_v12, %v1247_v30  ;;  %v910_v30 = vld [vmem:[%s2079_s6 + $0x70] sm:$0xff]  ;;  %v911_v31 = vld [vmem:[%s2079_s6 + $0x78] sm:$0xff] }
 0x23a   :  { %v1246_v36 = vadd.f32 -1.0, %v1680_v34  ;;  %v817_v39 = vsel %vm797_vm14, %v793_v14, %v1245_v33  ;;  %v1588_v14 = vpack.c.bf16 %v899_v11, %v898_v10  ;;  %v1606_v33 = vpack.c.bf16 %v911_v31, %v910_v30 }
 0x23b   :  { %v820_v38 = vsel %vm800_vm13, %v796_v18, %v1248_v35  ;;  %v1591_v18 = vpack.c.bf16 %v901_v17, %v900_v16 }
 0x23c   :  { %v1552_v40 = vpack.c.bf16 %v820_v38, %v819_v37  ;;  %v818_v41 = vsel %vm798_vm15, %v794_v21, %v1246_v36  ;;  %v904_v21 = vld [vmem:[%s2079_s6 + $0x40] sm:$0xff] }
 0x23d   :  { %v1549_v42 = vpack.c.bf16 %v818_v41, %v817_v39  ;;  %v1597_v23 = vpack.c.bf16 %v905_v22, %v904_v21 }
 0x23f   :  { %1550 = vmatpush3.bf16.msra.mxu0 %v1549_v42 }
 0x240   :  { %1551 = vmatprep.subr.bf16.mxu0 %v1681_v7 }
 0x243   :  { %1553 = vmatpush3.bf16.msra.mxu0 %v1552_v40 }
 0x244   :  { %1554 = vmatprep.subr.bf16.mxu0 %v1681_v7 }
 0x246   :  { %1465 = vmatmul.mubr.msk.f32.vlgmr.msra.gmra.mrb[4].mxu0 %vm822_vm0, %v821_v43 }
 0x247   :  { %1556 = vmatpush3.bf16.msra.mxu0 %v1549_v42  ;;  %1475 = vmatprep.mubr.msk.f32.mxu0 %vm1682_vm11, %v1683_v8 }
 0x248   :  { %1557 = vmatprep.subr.bf16.mxu0 %v1681_v7 }
 0x24b   :  { %1559 = vmatpush3.bf16.msra.mxu0 %v1552_v40 }
 0x24c   :  { %1560 = vmatprep.subr.bf16.mxu0 %v1681_v7 }
 0x24e   :  { %1476 = vmatmul.mubr.msk.f32.vlgmr.msra.gmra.mrb[6].mxu0 %vm822_vm0, %v1250_v46 }
 0x24f   :  { %1562 = vmatpush3.bf16.msra.mxu0 %v1561_v47  ;;  %1510 = vmatprep.mubr.msk.f32.mxu0 %vm1682_vm11, %v1683_v8 }
 0x250   :  { %1563 = vmatprep.subr.bf16.mxu0 %v1681_v7 }
 0x253   :  { %1565 = vmatpush3.bf16.msra.mxu0 %v1564_v50 }
 0x254   :  { %1566 = vmatprep.subr.bf16.mxu0 %v1681_v7 }
 0x257   :  { %1568 = vmatpush3.bf16.msra.mxu0 %v1567_v53 }
 0x258   :  { %1569 = vmatprep.subr.bf16.mxu0 %v1681_v7 }
 0x25b   :  { %1571 = vmatpush3.bf16.msra.mxu0 %v1570_v57 }
 0x25c   :  { %1572 = vmatprep.subr.bf16.mxu0 %v1681_v7 }
 0x25f   :  { %1574 = vmatpush3.bf16.msra.mxu0 %v1573_v9 }
 0x260   :  { %1575 = vmatprep.subr.bf16.mxu0 %v1681_v7 }
 0x263   :  { %1577 = vmatpush3.bf16.msra.mxu0 %v1576_v15 }
 0x264   :  { %1578 = vmatprep.subr.bf16.mxu0 %v1681_v7 }
 0x267   :  { %1580 = vmatpush3.bf16.msra.mxu0 %v1579_v61 }
 0x268   :  { %1581 = vmatprep.subr.bf16.mxu0 %v1681_v7 }
 0x26b   :  { %1583 = vmatpush3.bf16.msra.mxu0 %v1582_v0 }
 0x26c   :  { %1584 = vmatprep.subr.bf16.mxu0 %v1681_v7 }
 0x319   :  { %v892_v1 = vpop.f32.mrb[4].mxu0 }
 0x31a   :  { %v1466_v2 = vpop.f32.mrb[5].mxu0 }
 0x321   :  { %v983_v12 = vpop.f32.mrb[6].mxu0 }
 0x322   :  { %v1477_v13 = vpop.f32.mrb[7].mxu0  ;;  %1511 = vmatmul.mubr.f32.vlgmr.msra.gmra.mrb[8].mxu0 %v983_v12 }
 0x323   :  { %1586 = vmatpush3.bf16.msra.mxu0 %v1585_v6  ;;  %1545 = vmatprep.mubr.msk.f32.mxu0 %vm1682_vm11, %v1683_v8  ;;  %v903_v8 = vld [vmem:[%s2079_s6 + $0x38] sm:$0xff] }
 0x324   :  { %1587 = vmatprep.subr.bf16.mxu0 %v1681_v7  ;;  %v1594_v20 = vpack.c.bf16 %v903_v8, %v902_v19 }
 0x327   :  { %1589 = vmatpush3.bf16.msra.mxu0 %v1588_v14 }
 0x328   :  { %1590 = vmatprep.subr.bf16.mxu0 %v1681_v7 }
 0x32b   :  { %1592 = vmatpush3.bf16.msra.mxu0 %v1591_v18 }
 0x32c   :  { %1593 = vmatprep.subr.bf16.mxu0 %v1681_v7 }
 0x32f   :  { %1595 = vmatpush3.bf16.msra.mxu0 %v1594_v20 }
 0x330   :  { %1596 = vmatprep.subr.bf16.mxu0 %v1681_v7 }
 0x333   :  { %1598 = vmatpush3.bf16.msra.mxu0 %v1597_v23 }
 0x334   :  { %1599 = vmatprep.subr.bf16.mxu0 %v1681_v7 }
 0x337   :  { %1601 = vmatpush3.bf16.msra.mxu0 %v1600_v26 }
 0x338   :  { %1602 = vmatprep.subr.bf16.mxu0 %v1681_v7 }
 0x33b   :  { %1604 = vmatpush3.bf16.msra.mxu0 %v1603_v29 }
 0x33c   :  { %1605 = vmatprep.subr.bf16.mxu0 %v1681_v7 }
 0x33f   :  { %1607 = vmatpush3.bf16.msra.mxu0 %v1606_v33 }
 0x342   :  { %1546 = vmatmul.mubr.f32.vlgmr.msra.gmra.mrb[8].mxu0 %v892_v1 }
 0x415   :  { %v1140_v34 = vpop.f32.mrb[8].mxu0 }
 0x416   :  { %1144 = vst [vmem:[%s2080_s7] sm:$0xff] %v1140_v34  ;;  %v1547_v35 = vpop.f32.mrb[9].mxu0 }

</bundles_post_ra>
